<compile_context>
chip_gen: v6e
topology: v6e:2x2x1
jax: 0.10.0
libtpu: 0.0.40
codegen_flags: <defaults>
</compile_context>

<pallas_src>
import functools
import math

import jax
import jax.numpy as jnp
from jax.experimental import pallas as pl
from jax.experimental.pallas import tpu as pltpu


def _round_up(x, m):
    return ((x + m - 1) // m) * m


# Safe on v5e/v6e (128 MiB physical) and v7x (64 MiB physical), above the 32 MiB
# default scoped limit.
_VMEM_LIMIT = 48 * 1024 * 1024


# ---------------------------------------------------------------------------
# Fused Linear:  y = [residual +] act( LN?(x) @ W + b )
#   W is pre-transposed/padded/cast: (K, Npad) bf16.  b is (1, Npad) f32.
# ---------------------------------------------------------------------------
def _linear_kernel(*refs, ln, act, residual, eps):
    it = iter(refs)
    x_ref = next(it)
    if ln:
        g_ref = next(it)
        bl_ref = next(it)
    w_ref = next(it)
    b_ref = next(it)
    if residual:
        r_ref = next(it)
    o_ref = next(it)

    x = x_ref[...]                                        # (tm, K) f32
    if ln:
        mean = jnp.mean(x, axis=-1, keepdims=True)
        xc = x - mean
        var = jnp.mean(xc * xc, axis=-1, keepdims=True)
        x = xc * jax.lax.rsqrt(var + eps) * g_ref[...] + bl_ref[...]

    # bf16 MXU operands, f32 accumulation.  Weight is already (K, Npad) bf16, so the
    # contraction is the natural (M,K)@(K,N) with no in-kernel transpose.
    y = jax.lax.dot_general(x.astype(jnp.bfloat16), w_ref[...],
                            (((1,), (0,)), ((), ())),
                            preferred_element_type=jnp.float32)
    y = y + b_ref[...]
    if act == "gelu":
        y = jax.nn.gelu(y, approximate=True)
    if residual:
        y = y + r_ref[...]
    o_ref[...] = y.astype(o_ref.dtype)


def linear(x, w_t, b2, *, n_out, ln=None, act=None, residual=None,
           block_m=256, eps=1e-6):
    """x: (M, K) f32.  w_t: (K, Npad) bf16.  b2: (1, Npad) f32.
    ln: optional (gamma, beta), each (K,), fused as a prologue on the x tile.
    residual: optional (M, Npad) f32, added before the store."""
    M, K = x.shape
    n_pad = w_t.shape[1]

    # Row tiling: never fall back to one whole-array tile; pad M up to tm instead.
    tm = min(block_m, _round_up(M, 8))
    m_pad = _round_up(M, tm)
    if m_pad != M:
        x = jnp.pad(x, ((0, m_pad - M), (0, 0)))
        if residual is not None:
            residual = jnp.pad(residual, ((0, m_pad - M), (0, 0)))

    in_specs = [pl.BlockSpec((tm, K), lambda i: (i, 0))]
    args = [x]
    if ln is not None:
        g, bl = ln
        in_specs += [pl.BlockSpec((1, K), lambda i: (0, 0)),
                     pl.BlockSpec((1, K), lambda i: (0, 0))]
        args += [g.reshape(1, K), bl.reshape(1, K)]
    # Grid-invariant weight/bias blocks: constant index_map -> VMEM-resident.
    in_specs += [pl.BlockSpec((K, n_pad), lambda i: (0, 0)),
                 pl.BlockSpec((1, n_pad), lambda i: (0, 0))]
    args += [w_t, b2]
    if residual is not None:
        in_specs += [pl.BlockSpec((tm, n_pad), lambda i: (i, 0))]
        args += [residual]

    out = pl.pallas_call(
        functools.partial(_linear_kernel, ln=ln is not None, act=act,
                          residual=residual is not None, eps=eps),
        out_shape=jax.ShapeDtypeStruct((m_pad, n_pad), x.dtype),
        grid=(m_pad // tm,),
        in_specs=in_specs,
        out_specs=pl.BlockSpec((tm, n_pad), lambda i: (i, 0)),
        compiler_params=pltpu.CompilerParams(
            dimension_semantics=("parallel",),
            vmem_limit_bytes=_VMEM_LIMIT),
    )(*args)
    return out[:M, :n_out]


# ---------------------------------------------------------------------------
# Multi-head self-attention: one grid step per batch element.
#   Input:  lane-dense (S, 3E) qkv block (un-transposed qkv linear output).
#   Output: lane-dense (S, E) block with all heads merged (single store).
# ---------------------------------------------------------------------------
def _attention_kernel(qkv_ref, o_ref, *, nh, head_dim, scale):
    E = nh * head_dim
    qkv = qkv_ref[...]                                    # (S, 3E) f32
    outs = []
    for h in range(nh):
        # 1/sqrt(D) folded into q (S*D elements, not the S*S score matrix).
        q = (qkv[:, h * head_dim:(h + 1) * head_dim] * scale).astype(jnp.bfloat16)
        k = qkv[:, E + h * head_dim:E + (h + 1) * head_dim].astype(jnp.bfloat16)
        v = qkv[:, 2 * E + h * head_dim:2 * E + (h + 1) * head_dim].astype(jnp.bfloat16)
        s = jax.lax.dot_general(q, k, (((1,), (1,)), ((), ())),
                                preferred_element_type=jnp.float32)   # (S, S)
        m = jnp.max(s, axis=-1, keepdims=True)
        p = jnp.exp(s - m)                                # f32 softmax numerics
        denom = jnp.sum(p, axis=-1, keepdims=True)
        o = jnp.dot(p.astype(jnp.bfloat16), v, preferred_element_type=jnp.float32)
        outs.append(o * pl.reciprocal(denom, approx=True))  # EUP reciprocal
    o_ref[...] = jnp.concatenate(outs, axis=-1).astype(o_ref.dtype)


def attention(qkv, *, nh):
    B, S, E3 = qkv.shape
    E = E3 // 3
    head_dim = E // nh
    scale = 1.0 / math.sqrt(head_dim)
    return pl.pallas_call(
        functools.partial(_attention_kernel, nh=nh, head_dim=head_dim, scale=scale),
        out_shape=jax.ShapeDtypeStruct((B, S, E), qkv.dtype),
        grid=(B,),
        in_specs=[pl.BlockSpec((None, S, 3 * E), lambda b: (b, 0, 0))],
        out_specs=pl.BlockSpec((None, S, E), lambda b: (b, 0, 0)),
        compiler_params=pltpu.CompilerParams(
            dimension_semantics=("parallel",),
            vmem_limit_bytes=_VMEM_LIMIT),
    )(qkv)


# ---------------------------------------------------------------------------
# One-time parameter prep: pad N to 128, transpose to (K, Npad), cast to bf16.
# ---------------------------------------------------------------------------
def prep_params(params):
    E = params["embed_dim"]

    def prep(w, b):
        n, k = w.shape
        n_pad = _round_up(n, 128)
        w_t = jnp.pad(w, ((0, n_pad - n), (0, 0))).T.astype(jnp.bfloat16)   # (K, Npad)
        b2 = jnp.pad(b, (0, n_pad - n)).reshape(1, n_pad).astype(jnp.float32)
        return w_t, b2

    pw, pb = prep(params["patch_w"].reshape(E, -1), params["patch_b"])
    hw, hb = prep(params["head_w"], params["head_b"])
    kp = {"patch_w": pw, "patch_b": pb, "head_w": hw, "head_b": hb, "blocks": []}
    for blk in params["blocks"]:
        qw, qb = prep(blk["qkv_w"], blk["qkv_b"])
        ow, ob = prep(blk["proj_w"], blk["proj_b"])
        f1w, f1b = prep(blk["fc1_w"], blk["fc1_b"])
        f2w, f2b = prep(blk["fc2_w"], blk["fc2_b"])
        kp["blocks"].append({"qkv_w": qw, "qkv_b": qb, "proj_w": ow, "proj_b": ob,
                             "fc1_w": f1w, "fc1_b": f1b, "fc2_w": f2w, "fc2_b": f2b})
    return kp


# ---------------------------------------------------------------------------
# ViT forward (Pallas kernels for every matmul / LN / attention)
# ---------------------------------------------------------------------------
def vit_forward(x, params, kparams):
    B, C, H, W = x.shape
    P = params["patch"]
    E = params["embed_dim"]
    nh = params["num_heads"]
    hp, wp = H // P, W // P
    n_patches = hp * wp
    S = n_patches + 1

    # Patch embedding: stride-P conv == unfold + linear (layout-only wrapper glue).
    patches = x.reshape(B, C, hp, P, wp, P).transpose(0, 2, 4, 1, 3, 5)
    patches = patches.reshape(B * n_patches, C * P * P)
    tokens = linear(patches, kparams["patch_w"], kparams["patch_b"],
                    n_out=E).reshape(B, n_patches, E)

    # cls token + positional embedding.
    cls = jnp.broadcast_to(params["cls"], (B, 1, E))
    h = (jnp.concatenate([cls, tokens], axis=1) + params["pos"]).reshape(B * S, E)

    for blk, kblk in zip(params["blocks"], kparams["blocks"]):
        # --- attention sub-block: LN1 fused into qkv, residual fused into proj ---
        qkv = linear(h, kblk["qkv_w"], kblk["qkv_b"], n_out=3 * E,
                     ln=(blk["ln1_g"], blk["ln1_b"]))
        o = attention(qkv.reshape(B, S, 3 * E), nh=nh)
        h = linear(o.reshape(B * S, E), kblk["proj_w"], kblk["proj_b"],
                   n_out=E, residual=h)

        # --- MLP sub-block: LN2 fused into fc1 (+GELU), residual fused into fc2 ---
        y = linear(h, kblk["fc1_w"], kblk["fc1_b"], n_out=params["hidden"],
                   ln=(blk["ln2_g"], blk["ln2_b"]), act="gelu")
        h = linear(y, kblk["fc2_w"], kblk["fc2_b"], n_out=E, residual=h)

    # Final LN fused into the head.  LN is per-token, so norm(cls) == norm(x)[:, 0].
    h = h.reshape(B, S, E)
    return linear(h[:, 0, :], kparams["head_w"], kparams["head_b"],
                  n_out=params["n_classes"],
                  ln=(params["norm_g"], params["norm_b"]))


# ---------------------------------------------------------------------------
# Pure-JAX reference (same math: f32 elementwise, bf16 MXU operands)
# ---------------------------------------------------------------------------
def _ref_linear(x, w, b, act=None):
    y = jax.lax.dot_general(x.astype(jnp.bfloat16), w.astype(jnp.bfloat16),
                            (((1,), (1,)), ((), ())),
                            preferred_element_type=jnp.float32) + b
    if act == "gelu":
        y = jax.nn.gelu(y, approximate=True)
    return y


def _ref_layernorm(x, g, b, eps=1e-6):
    mean = jnp.mean(x, axis=-1, keepdims=True)
    xc = x - mean
    var = jnp.mean(xc * xc, axis=-1, keepdims=True)
    return xc * jax.lax.rsqrt(var + eps) * g + b


def vit_ref(x, params):
    B, C, H, W = x.shape
    P = params["patch"]
    E = params["embed_dim"]
    nh = params["num_heads"]
    hp, wp = H // P, W // P
    n_patches = hp * wp
    S = n_patches + 1
    head_dim = E // nh
    scale = 1.0 / math.sqrt(head_dim)

    patches = x.reshape(B, C, hp, P, wp, P).transpose(0, 2, 4, 1, 3, 5)
    patches = patches.reshape(B * n_patches, C * P * P)
    pe_w = params["patch_w"].reshape(E, C * P * P)
    tokens = _ref_linear(patches, pe_w, params["patch_b"]).reshape(B, n_patches, E)

    cls = jnp.broadcast_to(params["cls"], (B, 1, E))
    h = jnp.concatenate([cls, tokens], axis=1) + params["pos"]

    for blk in params["blocks"]:
        y = _ref_layernorm(h, blk["ln1_g"], blk["ln1_b"])
        qkv = _ref_linear(y.reshape(B * S, E), blk["qkv_w"], blk["qkv_b"])
        qkv = qkv.reshape(B, S, 3, nh, head_dim).transpose(2, 0, 3, 1, 4)
        q, k, v = qkv[0], qkv[1], qkv[2]                      # (B, nh, S, D)
        qs = (q * scale).astype(jnp.bfloat16)
        s = jnp.einsum("bhqd,bhkd->bhqk", qs, k.astype(jnp.bfloat16),
                       preferred_element_type=jnp.float32)
        m = jnp.max(s, axis=-1, keepdims=True)
        p = jnp.exp(s - m)
        denom = jnp.sum(p, axis=-1, keepdims=True)
        o = jnp.einsum("bhqk,bhkd->bhqd", p.astype(jnp.bfloat16),
                       v.astype(jnp.bfloat16),
                       preferred_element_type=jnp.float32) / denom
        o = o.transpose(0, 2, 1, 3).reshape(B * S, E)
        h = h + _ref_linear(o, blk["proj_w"], blk["proj_b"]).reshape(B, S, E)

        y = _ref_layernorm(h, blk["ln2_g"], blk["ln2_b"])
        y = _ref_linear(y.reshape(B * S, E), blk["fc1_w"], blk["fc1_b"], act="gelu")
        h = h + _ref_linear(y, blk["fc2_w"], blk["fc2_b"]).reshape(B, S, E)

    h = _ref_layernorm(h, params["norm_g"], params["norm_b"])
    return _ref_linear(h[:, 0, :], params["head_w"], params["head_b"])


# ---------------------------------------------------------------------------
# Deterministic parameter init (timm weights cannot be loaded in-script)
# ---------------------------------------------------------------------------
def init_params(key, *, C, P, E, nh, depth, hidden, n_classes, n_patches):
    ks = jax.random.split(key, 6 + depth)

    def nrm(k, shape, scale=0.02):
        return jax.random.normal(k, shape, dtype=jnp.float32) * scale

    params = {
        "patch": P, "embed_dim": E, "num_heads": nh,
        "hidden": hidden, "n_classes": n_classes,
        "patch_w": nrm(ks[0], (E, C, P, P)),
        "patch_b": nrm(ks[1], (E,)),
        "cls": nrm(ks[2], (1, 1, E)),
        "pos": nrm(ks[3], (1, n_patches + 1, E)),
        "norm_g": jnp.ones((E,), jnp.float32),
        "norm_b": jnp.zeros((E,), jnp.float32),
        "head_w": nrm(ks[4], (n_classes, E)),
        "head_b": nrm(ks[5], (n_classes,)),
        "blocks": [],
    }
    for d in range(depth):
        bk = jax.random.split(ks[6 + d], 8)
        params["blocks"].append({
            "ln1_g": jnp.ones((E,), jnp.float32),
            "ln1_b": jnp.zeros((E,), jnp.float32),
            "qkv_w": nrm(bk[0], (3 * E, E)),
            "qkv_b": nrm(bk[1], (3 * E,)),
            "proj_w": nrm(bk[2], (E, E)),
            "proj_b": nrm(bk[3], (E,)),
            "ln2_g": jnp.ones((E,), jnp.float32),
            "ln2_b": jnp.zeros((E,), jnp.float32),
            "fc1_w": nrm(bk[4], (hidden, E)),
            "fc1_b": nrm(bk[5], (hidden,)),
            "fc2_w": nrm(bk[6], (E, hidden)),
            "fc2_b": nrm(bk[7], (E,)),
        })
    return params


if __name__ == "__main__":
    key = jax.random.PRNGKey(0)
    kx, kp = jax.random.split(key)

    # Small shapes consistent with the module structure (scaled-down ViT-B/16):
    B, C, IMG, P = 2, 3, 32, 16          # 2x2 = 4 patches, seq = 5 with cls
    E, NH, DEPTH, HIDDEN, NCLS = 128, 2, 2, 256, 10
    n_patches = (IMG // P) ** 2

    x = jax.random.normal(kx, (B, C, IMG, IMG), dtype=jnp.float32)
    params = init_params(kp, C=C, P=P, E=E, nh=NH, depth=DEPTH,
                         hidden=HIDDEN, n_classes=NCLS, n_patches=n_patches)
    kparams = prep_params(params)        # one-time: pad / transpose / bf16 cast

    out = vit_forward(x, params, kparams)
    out = jax.block_until_ready(out)

    ref = vit_ref(x, params)
    assert out.shape == (B, NCLS), out.shape
    max_diff = jnp.max(jnp.abs(out - ref))
    # Tolerance covers the approx EUP reciprocal in softmax; everything else
    # (bf16 dot operands, f32 elementwise) is mirrored exactly in the reference.
    assert jnp.allclose(out, ref, atol=5e-3, rtol=5e-3), f"max abs diff {max_diff}"

    print("KERNEL_OK")
</pallas_src>

<mosaic_0001>
module attributes {stable_mosaic.version = 11 : i64} {
  func.func @_linear_kernel(%arg0: i32, %arg1: memref<8x768xf32, #tpu.memory_space<vmem>>, %arg2: memref<768x128xbf16, #tpu.memory_space<vmem>>, %arg3: memref<1x128xf32, #tpu.memory_space<vmem>>, %arg4: memref<8x128xf32, #tpu.memory_space<vmem>>) attributes {dimension_semantics = [#tpu.dimension_semantics<parallel>], iteration_bounds = array<i64: 1>, scalar_prefetch = 0 : i64, scratch_operands = 0 : i64, tpu.core_type = #tpu.core_type<tc>, window_params = [{transform_indices = @transform_0, window_bounds = array<i64: 8, 768>}, {pipeline_mode = #tpu.pipeline_mode<synchronous>, transform_indices = @transform_1, window_bounds = array<i64: 768, 128>}, {pipeline_mode = #tpu.pipeline_mode<synchronous>, transform_indices = @transform_2, window_bounds = array<i64: 1, 128>}, {transform_indices = @transform_3, window_bounds = array<i64: 8, 128>}]} {
    %c0 = arith.constant 0 : index
    %c0_0 = arith.constant 0 : index
    %0 = vector.load %arg1[%c0, %c0_0] : memref<8x768xf32, #tpu.memory_space<vmem>>, vector<8x768xf32>
    %1 = arith.truncf %0 : vector<8x768xf32> to vector<8x768xbf16>
    %c0_1 = arith.constant 0 : index
    %c0_2 = arith.constant 0 : index
    %2 = vector.load %arg2[%c0_1, %c0_2] : memref<768x128xbf16, #tpu.memory_space<vmem>>, vector<768x128xbf16>
    %cst = arith.constant dense<0.000000e+00> : vector<8x128xf32>
    %3 = tpu.matmul %1, %2, %cst {dimension_numbers = #tpu.dot_dimension_numbers<[1], [0], [0], [1], [0, 0, 1, 1], [], []>} : vector<8x768xbf16>, vector<768x128xbf16>, vector<8x128xf32> -> vector<8x128xf32>
    %c0_3 = arith.constant 0 : index
    %c0_4 = arith.constant 0 : index
    %4 = vector.load %arg3[%c0_3, %c0_4] : memref<1x128xf32, #tpu.memory_space<vmem>>, vector<1x128xf32>
    %5 = vector.broadcast %4 : vector<1x128xf32> to vector<8x128xf32>
    %6 = arith.addf %3, %5 : vector<8x128xf32>
    %c0_5 = arith.constant 0 : index
    %c0_6 = arith.constant 0 : index
    %7 = vector.load %arg4[%c0_5, %c0_6] : memref<8x128xf32, #tpu.memory_space<vmem>>, vector<8x128xf32>
    tpu.vector_store %arg4[%c0_5, %c0_6], %6 {strides = array<i32>} : memref<8x128xf32, #tpu.memory_space<vmem>>, vector<8x128xf32>,
    return
  }
  func.func @transform_0(%arg0: i32) -> (i32, i32) {
    %c0_i32 = arith.constant 0 : i32
    %c0_i32_0 = arith.constant 0 : i32
    return %arg0, %c0_i32 : i32, i32
  }
  func.func @transform_1(%arg0: i32) -> (i32, i32) {
    %c0_i32 = arith.constant 0 : i32
    %c0_i32_0 = arith.constant 0 : i32
    %c0_i32_1 = arith.constant 0 : i32
    return %c0_i32, %c0_i32_0 : i32, i32
  }
  func.func @transform_2(%arg0: i32) -> (i32, i32) {
    %c0_i32 = arith.constant 0 : i32
    %c0_i32_0 = arith.constant 0 : i32
    %c0_i32_1 = arith.constant 0 : i32
    return %c0_i32, %c0_i32_0 : i32, i32
  }
  func.func @transform_3(%arg0: i32) -> (i32, i32) {
    %c0_i32 = arith.constant 0 : i32
    %c0_i32_0 = arith.constant 0 : i32
    return %arg0, %c0_i32 : i32, i32
  }
}

</mosaic_0001>

<bundles_post_ra>
// kernel: tpu_custom_call.1
= control target key start
LH: loop header
LB: loop body
LE: loop exit
PB: predicated region body
PF: predicated region fallthrough
CT: control target
= control target key end

     0   :  { %8 = vsyncpa [#allocation3], 0  ;;  %s853_s0 = inlined_call_operand.hbm [shape: f32[8,768], index: 0, kind: input, shape index: {}]   ;;  %s854_s1 = inlined_call_operand.hbm [shape: bf16[768,128], index: 1, kind: input, shape index: {}]   ;;  %s855_s2 = inlined_call_operand.vmem [shape: f32[1,128], index: 2, kind: input, shape index: {}]   ;;  %s856_s3 = inlined_call_operand.hbm [shape: f32[8,128], index: 3, kind: output, shape index: {}]  }
   0x1   :  { %9 = vsyncpa [#allocation6], 0 }
   0x2   :  { %10 = vsyncpa [#allocation4], 0  ;;  %s816_s12 = smov [#allocation2]   ;;  %s817_s14 = smov [#allocation5]  }
   0x3   :  { %s17_s13 = sshll.u32 %s816_s12, 4  ;;  %s26_s15 = sshll.u32 %s817_s14, 4  ;;  %s18_s13 = int_to_ptr.vmem [resolvable:$true] %s17_s13  ;;  %s27_s15 = int_to_ptr.vmem [resolvable:$true] %s26_s15 }
   0x4   :  { %s758_s16 = scalar_lea.vmem %s18_s13, 768  ;;  %p763_p1 = scmp.lt.s32.totalorder %s18_s13, %s18_s13 }
   0x5   :  { %p759_p0 = scmp.ne.s32.totalorder %s18_s13, %s758_s16  ;;  %p764_p2 = scmp.lt.s32.totalorder %s758_s16, %s758_s16 }
   0x7   :  { %p765_p3 = por %p764_p2, %p763_p1 }
   0x9   :  { %p766_p4 = pnand %p765_p3, %p759_p0 }
   0xb   :  { %769 = shalt.err (!%p766_p4)
}
   0xc   :  { %20 = dma.hbm_to_vmem [thread:$0]  %s853_s0, 768, %s18_s13, [#allocation3]  }
   0xd   :  { %s778_s19 = scalar_lea.vmem %s27_s15, 6144  ;;  %p783_p6 = scmp.lt.s32.totalorder %s27_s15, %s27_s15 }
   0xe   :  { %p779_p5 = scmp.ne.s32.totalorder %s27_s15, %s778_s19  ;;  %p784_p7 = scmp.lt.s32.totalorder %s778_s19, %s778_s19 }
  0x10   :  { %p785_p8 = por %p784_p7, %p783_p6 }
  0x12   :  { %p786_p9 = pnand %p785_p8, %p779_p5 }
  0x14   :  { %789 = shalt.err (!%p786_p9)
}
  0x15   :  { %s818_s20 = smov 64   ;;  %s819_s21 = smov 4  }
  0x16   :  { %32 = dma.hbm_to_vmem [thread:$0]  %s854_s1, 6144, %s27_s15, [#allocation6], %s818_s20, %s818_s20, %s819_s21  }
  0x17   :  { %810 = dma.done.wait [#allocation3], 768  }
  0x18   :  { %811 = vsyncadd [#allocation3], 4294966528 }
  0x19   :  { %812 = dma.done.wait [#allocation6], 6144  }
  0x1a   :  { %813 = vsyncadd [#allocation6], 4294961152  ;;  %v702_v0 = vld [vmem:[#allocation5 + $0x78] sm:$0xff]   ;;  %v706_v4 = vld [vmem:[#allocation5 + $0x70] sm:$0xff]   ;;  %s820_s24 = smov [#allocation7]  }
  0x1b   :  { %v703_v1 = vld [vmem:[#allocation5 + $0x38] sm:$0xff]   ;;  %631 = vmatprep.subr.bf16.mxu0 %v702_v0  ;;  %v707_v5 = vld [vmem:[#allocation5 + $0x30] sm:$0xff]   ;;  %v710_v8 = vld [vmem:[#allocation5 + $0x68] sm:$0xff]   ;;  %s572_s25 = sshll.u32 %s820_s24, 4  ;;  %s573_s25 = int_to_ptr.vmem [resolvable:$true] %s572_s25 }
  0x1c   :  { %v704_v2 = vld [vmem:[#allocation5 + $0xf8] sm:$0xff]   ;;  %632 = vmatpush3.bf16.msra.mxu0 %v703_v1  ;;  %v708_v6 = vld [vmem:[#allocation5 + $0xf0] sm:$0xff]   ;;  %v711_v9 = vld [vmem:[#allocation5 + $0x28] sm:$0xff]   ;;  %s790_s26 = scalar_lea.vmem %s573_s25, 128  ;;  %p795_p11 = scmp.lt.s32.totalorder %s573_s25, %s573_s25 }
  0x1d   :  { %v705_v3 = vld [vmem:[#allocation5 + $0xb8] sm:$0xff]   ;;  %653 = vmatprep.subr.bf16.mxu1 %v704_v2  ;;  %633 = vmatprep.subr.bf16.mxu0 %v706_v4  ;;  %v709_v7 = vld [vmem:[#allocation5 + $0xb0] sm:$0xff]   ;;  %v712_v10 = vld [vmem:[#allocation5 + $0xe8] sm:$0xff]   ;;  %p791_p10 = scmp.ne.s32.totalorder %s573_s25, %s790_s26  ;;  %p796_p12 = scmp.lt.s32.totalorder %s790_s26, %s790_s26 }
  0x1e   :  { %654 = vmatpush3.bf16.msra.mxu1 %v705_v3  ;;  %v713_v11 = vld [vmem:[#allocation5 + $0xa8] sm:$0xff]   ;;  %v714_v12 = vld [vmem:[#allocation5 + $0x60] sm:$0xff]   ;;  %v718_v16 = vld [vmem:[#allocation5 + $0x58] sm:$0xff]  }
  0x1f   :  { %655 = vmatprep.subr.bf16.mxu1 %v708_v6  ;;  %v715_v13 = vld [vmem:[#allocation5 + $0x20] sm:$0xff]   ;;  %v719_v17 = vld [vmem:[#allocation5 + $0x18] sm:$0xff]   ;;  %v722_v20 = vld [vmem:[#allocation5 + $0x50] sm:$0xff]   ;;  %p797_p13 = por %p796_p12, %p795_p11 }
  0x20   :  { %634 = vmatpush3.bf16.msra.mxu0 %v707_v5  ;;  %v716_v14 = vld [vmem:[#allocation5 + $0xe0] sm:$0xff]   ;;  %v720_v18 = vld [vmem:[#allocation5 + $0xd8] sm:$0xff]   ;;  %v723_v21 = vld [vmem:[#allocation5 + $0x10] sm:$0xff]  }
  0x21   :  { %635 = vmatprep.subr.bf16.mxu0 %v710_v8  ;;  %v717_v15 = vld [vmem:[#allocation5 + $0xa0] sm:$0xff]   ;;  %v721_v19 = vld [vmem:[#allocation5 + $0x98] sm:$0xff]   ;;  %v724_v22 = vld [vmem:[#allocation5 + $0xd0] sm:$0xff]   ;;  %p798_p0 = pnand %p797_p13, %p791_p10 }
  0x22   :  { %656 = vmatpush3.bf16.msra.mxu1 %v709_v7  ;;  %v725_v23 = vld [vmem:[#allocation5 + $0x90] sm:$0xff]   ;;  %v726_v24 = vld [vmem:[#allocation5 + $0x48] sm:$0xff]   ;;  %v730_v28 = vld [vmem:[#allocation5 + $0x40] sm:$0xff]  }
  0x23   :  { %657 = vmatprep.subr.bf16.mxu1 %v712_v10  ;;  %v727_v25 = vld [vmem:[#allocation5 + $0x8] sm:$0xff]   ;;  %v731_v29 = vld [vmem:[#allocation5] sm:$0xff]   ;;  %v43_v31 = vld [vmem:[#allocation2 + $0x8] sm:$0xff] }
  0x24   :  { %636 = vmatpush3.bf16.msra.mxu0 %v711_v9  ;;  %v728_v26 = vld [vmem:[#allocation5 + $0xc8] sm:$0xff]   ;;  %v732_v30 = vld [vmem:[#allocation5 + $0xc0] sm:$0xff]   ;;  %v49_v32 = vpack.c.bf16 %v43_v31, %v43_v31  ;;  %v42_v34 = vld [vmem:[#allocation2] sm:$0xff] }
  0x25   :  { %637 = vmatprep.subr.bf16.mxu0 %v714_v12  ;;  %v729_v27 = vld [vmem:[#allocation5 + $0x88] sm:$0xff]   ;;  %v733_v33 = vld [vmem:[#allocation5 + $0x80] sm:$0xff]   ;;  %v48_v35 = vpack.c.bf16 %v42_v34, %v42_v34  ;;  %v734_v36 = vld [vmem:[#allocation5 + $0x178] sm:$0xff]  }
  0x26   :  { %658 = vmatpush3.bf16.msra.mxu1 %v713_v11  ;;  %v45_v37 = vld [vmem:[#allocation2 + $0x18] sm:$0xff]  ;;  %477 = vmatprep.mubr.bf16.mxu0 %v49_v32  ;;  %v735_v39 = vld [vmem:[#allocation5 + $0x138] sm:$0xff]   ;;  %v44_v40 = vld [vmem:[#allocation2 + $0x10] sm:$0xff] }
  0x27   :  { %659 = vmatprep.subr.bf16.mxu1 %v716_v14  ;;  %v51_v38 = vpack.c.bf16 %v45_v37, %v45_v37  ;;  %v50_v41 = vpack.c.bf16 %v44_v40, %v44_v40  ;;  %v736_v42 = vld [vmem:[#allocation5 + $0x170] sm:$0xff]   ;;  %v738_v44 = vld [vmem:[#allocation5 + $0x168] sm:$0xff]   ;;  %v740_v46 = vld [vmem:[#allocation5 + $0x160] sm:$0xff]  }
  0x28   :  { %638 = vmatpush3.bf16.msra.mxu0 %v715_v13  ;;  %v737_v43 = vld [vmem:[#allocation5 + $0x130] sm:$0xff]   ;;  %v739_v45 = vld [vmem:[#allocation5 + $0x128] sm:$0xff]   ;;  %v741_v47 = vld [vmem:[#allocation5 + $0x120] sm:$0xff]  }
  0x29   :  { %639 = vmatprep.subr.bf16.mxu0 %v718_v16  ;;  %517 = vmatprep.mubr.bf16.mxu1 %v51_v38  ;;  %v742_v48 = vld [vmem:[#allocation5 + $0x158] sm:$0xff]   ;;  %v744_v50 = vld [vmem:[#allocation5 + $0x150] sm:$0xff]   ;;  %v746_v54 = vld [vmem:[#allocation5 + $0x148] sm:$0xff]  }
  0x2a   :  { %660 = vmatpush3.bf16.msra.mxu1 %v717_v15  ;;  %v743_v49 = vld [vmem:[#allocation5 + $0x118] sm:$0xff]   ;;  %v745_v53 = vld [vmem:[#allocation5 + $0x110] sm:$0xff]   ;;  %v747_v55 = vld [vmem:[#allocation5 + $0x108] sm:$0xff]  }
  0x2b   :  { %661 = vmatprep.subr.bf16.mxu1 %v720_v18  ;;  %v47_v51 = vld [vmem:[#allocation2 + $0x28] sm:$0xff]  ;;  %v748_v56 = vld [vmem:[#allocation5 + $0x140] sm:$0xff]   ;;  %v46_v58 = vld [vmem:[#allocation2 + $0x20] sm:$0xff] }
  0x2c   :  { %640 = vmatpush3.bf16.msra.mxu0 %v719_v17  ;;  %v53_v52 = vpack.c.bf16 %v47_v51, %v47_v51  ;;  %v749_v57 = vld [vmem:[#allocation5 + $0x100] sm:$0xff]   ;;  %v52_v59 = vpack.c.bf16 %v46_v58, %v46_v58  ;;  %v582_v5 = vld [vmem:[%s855_s2] ss:$0 sm:$0xff] }
  0x2d   :  { %641 = vmatprep.subr.bf16.mxu0 %v722_v20 }
  0x2e   :  { %662 = vmatpush3.bf16.msra.mxu1 %v721_v19 }
  0x2f   :  { %663 = vmatprep.subr.bf16.mxu1 %v724_v22 }
  0x30   :  { %642 = vmatpush3.bf16.msra.mxu0 %v723_v21 }
  0x31   :  { %643 = vmatprep.subr.bf16.mxu0 %v726_v24 }
  0x32   :  { %664 = vmatpush3.bf16.msra.mxu1 %v725_v23 }
  0x33   :  { %665 = vmatprep.subr.bf16.mxu1 %v728_v26 }
  0x34   :  { %644 = vmatpush3.bf16.msra.mxu0 %v727_v25 }
  0x35   :  { %645 = vmatprep.subr.bf16.mxu0 %v730_v28 }
  0x36   :  { %666 = vmatpush3.bf16.msra.mxu1 %v729_v27 }
  0x37   :  { %667 = vmatprep.subr.bf16.mxu1 %v732_v30 }
  0x38   :  { %646 = vmatpush3.bf16.msra.mxu0 %v731_v29 }
  0x39   :  { %675 = vmatprep.subr.bf16.mxu0 %v734_v36 }
  0x3a   :  { %668 = vmatpush3.bf16.msra.mxu1 %v733_v33 }
  0x3b   :  { %478 = vmatmul.mubr.bf16.vlgmr.msra.gmra.mxu0 %v48_v35 }
  0x3c   :  { %676 = vmatpush3.bf16.msra.mxu0 %v735_v39  ;;  %557 = vmatprep.mubr.bf16.mxu0 %v53_v52 }
  0x3d   :  { %518 = vmatmul.mubr.bf16.vlgmr.msra.gmra.mxu1 %v50_v41  ;;  %677 = vmatprep.subr.bf16.mxu0 %v736_v42 }
  0x40   :  { %678 = vmatpush3.bf16.msra.mxu0 %v737_v43 }
  0x41   :  { %679 = vmatprep.subr.bf16.mxu0 %v738_v44 }
  0x44   :  { %680 = vmatpush3.bf16.msra.mxu0 %v739_v45 }
  0x45   :  { %681 = vmatprep.subr.bf16.mxu0 %v740_v46 }
  0x48   :  { %682 = vmatpush3.bf16.msra.mxu0 %v741_v47 }
  0x49   :  { %683 = vmatprep.subr.bf16.mxu0 %v742_v48 }
  0x4c   :  { %684 = vmatpush3.bf16.msra.mxu0 %v743_v49 }
  0x4d   :  { %685 = vmatprep.subr.bf16.mxu0 %v744_v50 }
  0x50   :  { %686 = vmatpush3.bf16.msra.mxu0 %v745_v53 }
  0x51   :  { %687 = vmatprep.subr.bf16.mxu0 %v746_v54 }
  0x54   :  { %688 = vmatpush3.bf16.msra.mxu0 %v747_v55 }
  0x55   :  { %689 = vmatprep.subr.bf16.mxu0 %v748_v56 }
  0x58   :  { %690 = vmatpush3.bf16.msra.mxu0 %v749_v57 }
  0x5b   :  { %558 = vmatmul.mubr.bf16.vlgmr.msra.gmra.mxu0 %v52_v59 }
  0xfb   :  { %v647_v60 = vpop.f32.mrf.mxu0 }
  0xfd   :  { %v648_v61 = vpop.f32.mrf.mxu0  ;;  %v669_v62 = vpop.f32.mrf.mxu1 }
  0xfe   :  { %v649_v4 = vadd.f32 %v648_v61, %v647_v60 }
  0xff   :  { %v650_v63 = vpop.f32.mrf.mxu0  ;;  %v670_v0 = vpop.f32.mrf.mxu1 }
 0x100   :  { %v480_v6 = vadd.f32 %v649_v4, %v582_v5  ;;  %v671_v7 = vadd.f32 %v670_v0, %v669_v62 }
 0x101   :  { %v651_v1 = vpop.f32.mrf.mxu0  ;;  %v672_v2 = vpop.f32.mrf.mxu1 }
 0x102   :  { %v520_v10 = vadd.f32 %v671_v7, %v480_v6 }
 0x103   :  { %v673_v3 = vpop.f32.mrf.mxu1 }
 0x11b   :  { %v691_v8 = vpop.f32.mrf.mxu0 }
 0x11d   :  { %v692_v9 = vpop.f32.mrf.mxu0 }
 0x11e   :  { %v693_v11 = vadd.f32 %v692_v9, %v691_v8 }
 0x11f   :  { %v694_v12 = vpop.f32.mrf.mxu0 }
 0x120   :  { %v560_v13 = vadd.f32 %v693_v11, %v520_v10 }
 0x121   :  { %v695_v14 = vpop.f32.mrf.mxu0 }
 0x122   :  { %565 = vst [vmem:[#allocation7] sm:$0xff] %v560_v13 }
 0x123   :  { %801 = shalt.err (!%p798_p0)
}
 0x124   :  { %575 = dma.vmem_to_hbm [thread:$0]  %s573_s25, 128, %s856_s3, [#allocation4]  }
 0x125   :  { %814 = dma.done.wait [#allocation4], 128  }
 0x126   :  { %815 = vsyncadd [#allocation4], 4294967168 }
 0x127   :  { %579 = vsyncpa [#allocation3], 1 }
 0x128   :  { %580 = vsyncpa [#allocation6], 1 }
 0x129   :  { %581 = vsyncpa [#allocation4], 1 }

</bundles_post_ra>
